<compile_context>
chip_gen: v5e
topology: v5e:2x2
jax: 0.10.0
libtpu: 0.0.40
codegen_flags: <defaults>
</compile_context>

<pallas_src>
import jax
import jax.numpy as jnp
from jax import lax
from jax.experimental import pallas as pl
from jax.experimental.pallas import tpu as pltpu


def _round_up(x, m):
    return ((x + m - 1) // m) * m


def _make_recurrence_kernel(t_chunk, t_total, unroll):
    """Build the per-chunk serial tanh recurrence kernel.

    Refs seen by the kernel:
      p_ref:     (t_chunk, Bp, Hp) f32   pre-activations P[t] = x_t @ W_ih^T + b
      w_hh_ref:  (Hp, Hp)          bf16  W_hh^T (zero-padded, pre-cast)
      h_out_ref: (Bp, Hp)          f32   last hidden state (written on last chunk)
      h_scratch: (Bp, Hp)          f32   hidden state carried across grid steps
    """

    def kernel(p_ref, w_hh_ref, h_out_ref, h_scratch):
        chunk = pl.program_id(0)

        @pl.when(chunk == 0)
        def _init():
            h_scratch[...] = jnp.zeros_like(h_scratch)

        w_hh = w_hh_ref[...]          # bf16 weight tile, hoisted out of the loop
        t0 = chunk * t_chunk

        def step(t, h):
            # bf16 MXU inputs (single systolic pass), f32 accumulation;
            # p, tanh and the h carry stay f32 on the VPU/EUP.
            pre = p_ref[t] + jnp.dot(h.astype(jnp.bfloat16), w_hh,
                                     preferred_element_type=jnp.float32)
            h_new = jnp.tanh(pre)
            # Guard zero-padded tail timesteps of the last chunk (no-op when
            # t_chunk divides T).
            return jnp.where(t0 + t < t_total, h_new, h)

        h = lax.fori_loop(0, t_chunk, step, h_scratch[...], unroll=unroll)
        h_scratch[...] = h

        @pl.when(chunk == pl.num_programs(0) - 1)
        def _finalize():
            h_out_ref[...] = h

    return kernel


def rnn_forward(x, emb_table, w_ih, w_hh, b_ih, b_hh, w_fc, b_fc, *, t_chunk=None):
    """Forward pass matching fc(rnn(emb(x))[:, -1, :]).

    x: (B, T) int32 token ids.  Returns (B, output_size) float32 logits.
    """
    B, T = x.shape
    H, E = w_ih.shape
    Bp = _round_up(max(B, 16), 16)     # 16 sublanes: bf16 LHS min tile for the MXU
    Hp = _round_up(max(H, 128), 128)   # lane-align hidden -> one aligned 128x128 tile

    if t_chunk is None:
        # Keep the double-buffered P chunk (2 * t_chunk * Bp * Hp * 4 B) well under
        # scoped VMEM on every chip (v5e 16 MiB / v6e 32 MiB / v7x 32 MiB).
        budget_bytes = 4 * 1024 * 1024
        t_chunk = max(1, min(T, budget_bytes // (2 * Bp * Hp * 4)))
    n_chunks = -(-T // t_chunk)
    t_pad = n_chunks * t_chunk
    unroll = max(1, min(t_chunk, 8))   # partial unroll: LLO visibility w/o blow-up

    # --- glue + hoisted input projection (one big XLA matmul, full MXU width) ---
    # Pad the *small* operands first so the big P buffer is produced directly in
    # its final padded, time-major (T, Bp, Hp) layout (no transpose / repad pass).
    emb = jnp.take(emb_table, x, axis=0).astype(jnp.float32)            # (B, T, E)
    emb_p = jnp.zeros((Bp, T, E), jnp.float32).at[:B].set(emb)           # (Bp, T, E)
    w_ih_p = jnp.zeros((Hp, E), jnp.float32).at[:H].set(w_ih.astype(jnp.float32))
    bias_p = jnp.zeros((Hp,), jnp.float32).at[:H].set((b_ih + b_hh).astype(jnp.float32))
    p = jnp.einsum('bte,he->tbh', emb_p, w_ih_p) + bias_p                # (T, Bp, Hp)
    if t_pad != T:
        p = jnp.pad(p, ((0, t_pad - T), (0, 0), (0, 0)))

    # W_hh^T zero-padded and pre-cast to bf16 once (padding is inert: padded hidden
    # cols/rows stay zero through tanh(0 + 0) = 0; batch rows are independent).
    w_hh_pad = (jnp.zeros((Hp, Hp), jnp.float32)
                .at[:H, :H].set(w_hh.T.astype(jnp.float32))
                .astype(jnp.bfloat16))

    kernel = _make_recurrence_kernel(t_chunk, T, unroll)
    h_last_pad = pl.pallas_call(
        kernel,
        out_shape=jax.ShapeDtypeStruct((Bp, Hp), jnp.float32),
        grid_spec=pltpu.PrefetchScalarGridSpec(
            num_scalar_prefetch=0,
            grid=(n_chunks,),
            in_specs=[
                # P: one chunk of timesteps per grid step (double-buffered DMA).
                pl.BlockSpec((t_chunk, Bp, Hp), lambda c: (c, 0, 0)),
                # W_hh^T: same block every step -> stays resident in VMEM.
                pl.BlockSpec((Hp, Hp), lambda c: (0, 0)),
            ],
            # Output block is invariant across the (serial) T axis; written once
            # under pl.when(last chunk).
            out_specs=pl.BlockSpec((Bp, Hp), lambda c: (0, 0)),
            scratch_shapes=[pltpu.VMEM((Bp, Hp), jnp.float32)],  # persistent h
        ),
        compiler_params=pltpu.CompilerParams(
            dimension_semantics=("arbitrary",)),
    )(p, w_hh_pad)

    # --- final FC on the last hidden state (lane-width-1 output: leave in XLA) ---
    h_last = h_last_pad[:B, :H]
    return h_last @ w_fc.T.astype(jnp.float32) + b_fc.astype(jnp.float32)


def reference_forward(x, emb_table, w_ih, w_hh, b_ih, b_hh, w_fc, b_fc):
    emb = jnp.take(emb_table, x, axis=0)  # (B, T, E)
    B, T, _ = emb.shape
    H = w_hh.shape[0]
    h = jnp.zeros((B, H), jnp.float32)
    for t in range(T):
        h = jnp.tanh(emb[:, t, :] @ w_ih.T + b_ih + h @ w_hh.T + b_hh)
    return h @ w_fc.T + b_fc


if __name__ == "__main__":
    # Small, module-consistent shapes.
    vocab_size = 64
    emb_size = 300
    hidden_size = 50
    output_size = 1
    padding_idx = 0
    B, T = 2, 8

    key = jax.random.PRNGKey(0)
    k_emb, k_wih, k_whh, k_bih, k_bhh, k_wfc, k_bfc, k_x = jax.random.split(key, 8)

    # Deterministic parameter init (shapes per nn.Embedding / nn.RNN / nn.Linear).
    emb_table = jax.random.normal(k_emb, (vocab_size, emb_size), jnp.float32)
    emb_table = emb_table.at[padding_idx].set(0.0)  # padding_idx row zeroed

    bound = 1.0 / jnp.sqrt(hidden_size)
    w_ih = jax.random.uniform(k_wih, (hidden_size, emb_size), jnp.float32, -bound, bound)
    w_hh = jax.random.uniform(k_whh, (hidden_size, hidden_size), jnp.float32, -bound, bound)
    b_ih = jax.random.uniform(k_bih, (hidden_size,), jnp.float32, -bound, bound)
    b_hh = jax.random.uniform(k_bhh, (hidden_size,), jnp.float32, -bound, bound)
    w_fc = jax.random.uniform(k_wfc, (output_size, hidden_size), jnp.float32, -bound, bound)
    b_fc = jax.random.uniform(k_bfc, (output_size,), jnp.float32, -bound, bound)

    x = jax.random.randint(k_x, (B, T), 0, vocab_size, dtype=jnp.int32)

    # t_chunk=4 -> grid=(2,) so the chunked / persistent-scratch path is exercised.
    out = rnn_forward(x, emb_table, w_ih, w_hh, b_ih, b_hh, w_fc, b_fc, t_chunk=4)
    out = jax.block_until_ready(out)

    ref = reference_forward(x, emb_table, w_ih, w_hh, b_ih, b_hh, w_fc, b_fc)
    assert out.shape == (B, output_size)
    # bf16 MXU inputs on the serial recurrence => slightly looser tolerance vs the
    # all-f32 reference (tanh is contractive; observed error is O(1e-3) at T=8).
    assert jnp.allclose(out, ref, atol=2e-2, rtol=2e-2)
    print("KERNEL_OK")
</pallas_src>

<mosaic_0001>
module attributes {stable_mosaic.version = 11 : i64} {
  func.func @kernel(%arg0: i32, %arg1: memref<4x16x128xf32, #tpu.memory_space<vmem>>, %arg2: memref<128x128xbf16, #tpu.memory_space<vmem>>, %arg3: memref<16x128xf32, #tpu.memory_space<vmem>>, %arg4: memref<16x128xf32, #tpu.memory_space<vmem>>) attributes {dimension_semantics = [#tpu.dimension_semantics<arbitrary>], iteration_bounds = array<i64: 2>, scalar_prefetch = 0 : i64, scratch_operands = 1 : i64, tpu.core_type = #tpu.core_type<tc>, window_params = [{transform_indices = @transform_0, window_bounds = array<i64: 4, 16, 128>}, {pipeline_mode = #tpu.pipeline_mode<synchronous>, transform_indices = @transform_1, window_bounds = array<i64: 128, 128>}, {pipeline_mode = #tpu.pipeline_mode<synchronous>, transform_indices = @transform_2, window_bounds = array<i64: 16, 128>}]} {
    %c0_i32 = arith.constant 0 : i32
    %0 = arith.cmpi eq, %arg0, %c0_i32 : i32
    %1 = arith.extui %0 : i1 to i32
    %c0_i32_0 = arith.constant 0 : i32
    %2 = arith.cmpi ne, %1, %c0_i32_0 : i32
    scf.if %2 {
      %cst_24 = arith.constant 0.000000e+00 : f32
      %50 = vector.broadcast %cst_24 : f32 to vector<16x128xf32>
      %c0_25 = arith.constant 0 : index
      %c0_26 = arith.constant 0 : index
      %51 = vector.load %arg4[%c0_25, %c0_26] : memref<16x128xf32, #tpu.memory_space<vmem>>, vector<16x128xf32>
      tpu.vector_store %arg4[%c0_25, %c0_26], %50 {strides = array<i32>} : memref<16x128xf32, #tpu.memory_space<vmem>>, vector<16x128xf32>,
    } else {
    }
    %c0 = arith.constant 0 : index
    %c0_1 = arith.constant 0 : index
    %3 = vector.load %arg2[%c0, %c0_1] : memref<128x128xbf16, #tpu.memory_space<vmem>>, vector<128x128xbf16>
    %c4_i32 = arith.constant 4 : i32
    %4 = arith.muli %arg0, %c4_i32 : i32
    %c0_2 = arith.constant 0 : index
    %c0_3 = arith.constant 0 : index
    %5 = vector.load %arg4[%c0_2, %c0_3] : memref<16x128xf32, #tpu.memory_space<vmem>>, vector<16x128xf32>
    %c0_i32_4 = arith.constant 0 : i32
    %6 = arith.index_cast %c0_i32_4 : i32 to index
    %c0_5 = arith.constant 0 : index
    %c0_6 = arith.constant 0 : index
    %7 = vector.load %arg1[%6, %c0_5, %c0_6] : memref<4x16x128xf32, #tpu.memory_space<vmem>>, vector<1x16x128xf32>
    %8 = vector.shape_cast %7 : vector<1x16x128xf32> to vector<16x128xf32>
    %9 = arith.truncf %5 : vector<16x128xf32> to vector<16x128xbf16>
    %cst = arith.constant dense<0.000000e+00> : vector<16x128xf32>
    %10 = tpu.matmul %9, %3, %cst {dimension_numbers = #tpu.dot_dimension_numbers<[1], [0], [0], [1], [0, 0, 1, 1], [], []>} : vector<16x128xbf16>, vector<128x128xbf16>, vector<16x128xf32> -> vector<16x128xf32>
    %11 = arith.addf %8, %10 : vector<16x128xf32>
    %12 = math.tanh %11 : vector<16x128xf32>
    %13 = arith.addi %4, %c0_i32_4 : i32
    %c8_i32 = arith.constant 8 : i32
    %14 = arith.cmpi slt, %13, %c8_i32 : i32
    %15 = arith.select %14, %12, %5 : vector<16x128xf32>
    %c1_i32 = arith.constant 1 : i32
    %16 = arith.index_cast %c1_i32 : i32 to index
    %c0_7 = arith.constant 0 : index
    %c0_8 = arith.constant 0 : index
    %17 = vector.load %arg1[%16, %c0_7, %c0_8] : memref<4x16x128xf32, #tpu.memory_space<vmem>>, vector<1x16x128xf32>
    %18 = vector.shape_cast %17 : vector<1x16x128xf32> to vector<16x128xf32>
    %19 = arith.truncf %15 : vector<16x128xf32> to vector<16x128xbf16>
    %cst_9 = arith.constant dense<0.000000e+00> : vector<16x128xf32>
    %20 = tpu.matmul %19, %3, %cst_9 {dimension_numbers = #tpu.dot_dimension_numbers<[1], [0], [0], [1], [0, 0, 1, 1], [], []>} : vector<16x128xbf16>, vector<128x128xbf16>, vector<16x128xf32> -> vector<16x128xf32>
    %21 = arith.addf %18, %20 : vector<16x128xf32>
    %22 = math.tanh %21 : vector<16x128xf32>
    %23 = arith.addi %4, %c1_i32 : i32
    %c8_i32_10 = arith.constant 8 : i32
    %24 = arith.cmpi slt, %23, %c8_i32_10 : i32
    %25 = arith.select %24, %22, %15 : vector<16x128xf32>
    %c2_i32 = arith.constant 2 : i32
    %26 = arith.index_cast %c2_i32 : i32 to index
    %c0_11 = arith.constant 0 : index
    %c0_12 = arith.constant 0 : index
    %27 = vector.load %arg1[%26, %c0_11, %c0_12] : memref<4x16x128xf32, #tpu.memory_space<vmem>>, vector<1x16x128xf32>
    %28 = vector.shape_cast %27 : vector<1x16x128xf32> to vector<16x128xf32>
    %29 = arith.truncf %25 : vector<16x128xf32> to vector<16x128xbf16>
    %cst_13 = arith.constant dense<0.000000e+00> : vector<16x128xf32>
    %30 = tpu.matmul %29, %3, %cst_13 {dimension_numbers = #tpu.dot_dimension_numbers<[1], [0], [0], [1], [0, 0, 1, 1], [], []>} : vector<16x128xbf16>, vector<128x128xbf16>, vector<16x128xf32> -> vector<16x128xf32>
    %31 = arith.addf %28, %30 : vector<16x128xf32>
    %32 = math.tanh %31 : vector<16x128xf32>
    %33 = arith.addi %4, %c2_i32 : i32
    %c8_i32_14 = arith.constant 8 : i32
    %34 = arith.cmpi slt, %33, %c8_i32_14 : i32
    %35 = arith.select %34, %32, %25 : vector<16x128xf32>
    %c3_i32 = arith.constant 3 : i32
    %36 = arith.index_cast %c3_i32 : i32 to index
    %c0_15 = arith.constant 0 : index
    %c0_16 = arith.constant 0 : index
    %37 = vector.load %arg1[%36, %c0_15, %c0_16] : memref<4x16x128xf32, #tpu.memory_space<vmem>>, vector<1x16x128xf32>
    %38 = vector.shape_cast %37 : vector<1x16x128xf32> to vector<16x128xf32>
    %39 = arith.truncf %35 : vector<16x128xf32> to vector<16x128xbf16>
    %cst_17 = arith.constant dense<0.000000e+00> : vector<16x128xf32>
    %40 = tpu.matmul %39, %3, %cst_17 {dimension_numbers = #tpu.dot_dimension_numbers<[1], [0], [0], [1], [0, 0, 1, 1], [], []>} : vector<16x128xbf16>, vector<128x128xbf16>, vector<16x128xf32> -> vector<16x128xf32>
    %41 = arith.addf %38, %40 : vector<16x128xf32>
    %42 = math.tanh %41 : vector<16x128xf32>
    %43 = arith.addi %4, %c3_i32 : i32
    %c8_i32_18 = arith.constant 8 : i32
    %44 = arith.cmpi slt, %43, %c8_i32_18 : i32
    %45 = arith.select %44, %42, %35 : vector<16x128xf32>
    %c4_i32_19 = arith.constant 4 : i32
    %c0_20 = arith.constant 0 : index
    %c0_21 = arith.constant 0 : index
    %46 = vector.load %arg4[%c0_20, %c0_21] : memref<16x128xf32, #tpu.memory_space<vmem>>, vector<16x128xf32>
    tpu.vector_store %arg4[%c0_20, %c0_21], %45 {strides = array<i32>} : memref<16x128xf32, #tpu.memory_space<vmem>>, vector<16x128xf32>,
    %c1_i32_22 = arith.constant 1 : i32
    %47 = arith.cmpi eq, %arg0, %c1_i32_22 : i32
    %48 = arith.extui %47 : i1 to i32
    %c0_i32_23 = arith.constant 0 : i32
    %49 = arith.cmpi ne, %48, %c0_i32_23 : i32
    scf.if %49 {
      %c0_24 = arith.constant 0 : index
      %c0_25 = arith.constant 0 : index
      %50 = vector.load %arg3[%c0_24, %c0_25] : memref<16x128xf32, #tpu.memory_space<vmem>>, vector<16x128xf32>
      tpu.vector_store %arg3[%c0_24, %c0_25], %45 {strides = array<i32>} : memref<16x128xf32, #tpu.memory_space<vmem>>, vector<16x128xf32>,
    } else {
    }
    return
  }
  func.func @transform_0(%arg0: i32) -> (i32, i32, i32) {
    %c0_i32 = arith.constant 0 : i32
    %c0_i32_0 = arith.constant 0 : i32
    %c0_i32_1 = arith.constant 0 : i32
    return %arg0, %c0_i32, %c0_i32_0 : i32, i32, i32
  }
  func.func @transform_1(%arg0: i32) -> (i32, i32) {
    %c0_i32 = arith.constant 0 : i32
    %c0_i32_0 = arith.constant 0 : i32
    %c0_i32_1 = arith.constant 0 : i32
    return %c0_i32, %c0_i32_0 : i32, i32
  }
  func.func @transform_2(%arg0: i32) -> (i32, i32) {
    %c0_i32 = arith.constant 0 : i32
    %c0_i32_0 = arith.constant 0 : i32
    %c0_i32_1 = arith.constant 0 : i32
    return %c0_i32, %c0_i32_0 : i32, i32
  }
}

</mosaic_0001>

<bundles_post_ra>
// kernel: tpu_custom_call.1
= control target key start
LH: loop header
LB: loop body
LE: loop exit
PB: predicated region body
PF: predicated region fallthrough
CT: control target
= control target key end

     0   :  { %7 = vsyncpa [#allocation4], 0  ;;  %s862_s0 = inlined_call_operand.hbm [shape: f32[8,16,128], index: 0, kind: input, shape index: {}]   ;;  %s863_s1 = inlined_call_operand.hbm [shape: bf16[128,128], index: 1, kind: input, shape index: {}]   ;;  %s864_s2 = inlined_call_operand.hbm [shape: f32[16,128], index: 2, kind: output, shape index: {}]  }
   0x1   :  { %9 = vsyncpa [#allocation4 + $0x1], 0 }
   0x2   :  { %10 = vsyncpa [#allocation7], 0 }
   0x3   :  { %11 = vsyncpa [#allocation5], 0  ;;  %s739_s9 = smov 0   ;;  %s741_s10 = smov 0  }
   0x4   :  { %s743_s11 = smov 0   ;;  %s745_s12 = smov 0  }
   0x5 LB: > { %s758_s13 = sadd.s32 4294967295, %s713_s12   ;;  %p37_p0 = scmp.ne.s32.totalorder %s705_s10, %s701_s9  ;;  %s713_s12 = sphi %s745_s12, %s871_s12   ;;  %s709_s11 = sphi %s743_s11, %s870_s11   ;;  %s705_s10 = sphi %s741_s10, %s869_s10   ;;  %s701_s9 = sphi %s739_s9, %s868_s9  }
   0x6   : > { %p38_p1 = scmp.eq.s32.totalorder %s758_s13, 0  ;;  %p438_p2 = scmp.ge.s32.totalorder %s713_s12, 1 }
   0x7   : > { %p90_p3 = scmp.lt.s32.totalorder %s713_s12, 3  ;;  %p439_p4 = scmp.ne.s32.totalorder %s758_s13, 0 }
   0x8   : > { %p767_p5 = por %p38_p1, %p37_p0  ;;  %s101_s17 = sshll.u32 %s863_s1, 4  ;;  %s102_s17 = int_to_ptr.hbm [resolvable:$true] %s101_s17 }
   0x9   : > { %p774_p6 = pnand %p438_p2, %p90_p3  ;;  %s715_s19 = smov [#allocation6]  }
   0xa   : > { %s103_s20 = sshll.u32 %s715_s19, 4  ;;  %s783_s21 = sadd.s32 1, %s713_s12   ;;  %s104_s20 = int_to_ptr.vmem [resolvable:$true] %s103_s20 }
   0xb   : > { %p513_p7 = pneg %p774_p6  ;;  %s716_s22 = smov 64  }
   0xc   : > { %s717_s23 = smov 4   ;;  %s21_s24 = ssub.s32 %s713_s12, %s783_s21 }
   0xd   : > { %p514_p8 = pnand %p513_p7, %p38_p1  ;;  %s24_s25 = sadd.s32 1, %s709_s11 }
   0xe   : > { %p22_p9 = scmp.eq.s32.totalorder %s21_s24, 0  ;;  %p31_p10 = scmp.ne.s32.totalorder %s709_s11, %s705_s10 }
   0xf   : > { %516 = dma.hbm_to_vmem [thread:$0]  (!%p514_p8), %s102_s17, 1024, %s104_s20, [#allocation7], %s716_s22, %s716_s22, %s717_s23  }
  0x10   : > { %p32_p11 = scmp.eq.s32.totalorder %s713_s12, 0  ;;  %p522_p12 = scmp.lt.s32.totalorder %s713_s12, 2 }
  0x11   : > { %s793_s26 = scalar_select %p22_p9, %s709_s11, %s24_s25  }
  0x12   : > { %p33_p13 = por %p32_p11, %p31_p10  ;;  %s117_s27 = sand.u32 1, %s709_s11  }
  0x13   : > { %s441_s28 = sshll.u32 %s117_s27, 6  ;;  %s494_s29 = sshll.u32 %s713_s12, 6 }
  0x14   : > { %s127_s4 = scalar_lea.hbm %s862_s0, %s494_s29  ;;  %s121_s5 = scalar_lea.vmem [#allocation3], %s441_s28 }
  0x15   : > { %s130_s6 = sshll.u32 %s121_s5, 4  ;;  %s128_s7 = sshll.u32 %s127_s4, 4  ;;  %s131_s6 = int_to_ptr.vmem [resolvable:$true] %s130_s6  ;;  %s129_s7 = int_to_ptr.hbm [resolvable:$true] %s128_s7 }
  0x16   : > { %p800_p0 = pnand %p522_p12, %p33_p13  ;;  %s118_s9 = scalar_lea.sflag [#allocation4], %s117_s27 }
  0x17   : > { %s613_s15 = sshra.s32 %s129_s7, 4  ;;  %s620_s19 = scalar_lea.hbm %s862_s0, 128  ;;  %s614_s15 = int_to_ptr.hbm [resolvable:$true] %s613_s15 }
  0x18   : > { %s615_s16 = scalar_lea.hbm %s614_s15, 64  ;;  %p617_p3 = pneg %p800_p0 }
  0x19   : > { %p616_p2 = scmp.ne.s32.totalorder %s614_s15, %s615_s16  ;;  %p621_p9 = scmp.lt.s32.totalorder %s614_s15, %s862_s0 }
  0x1a   : > { %p622_p10 = scmp.lt.s32.totalorder %s620_s19, %s615_s16 }
  0x1b   : > { %p618_p7 = pnand %p617_p3, %p616_p2 }
  0x1c   : > { %p623_p11 = por %p622_p10, %p621_p9 }
  0x1d   : > { %p619_p8 = pneg %p618_p7 }
  0x1f   : > { %p624_p12 = pnand %p623_p11, %p619_p8 }
  0x21   : > { %627 = shalt.err (!%p624_p12)
}
  0x22   : > { %s718_s23 = smov 128   ;;  %s719_s24 = smov 8  }
  0x23   : > { %520 = dma.hbm_to_vmem [thread:$0]  (!%p800_p0), %s129_s7, 1024, %s131_s6, %s118_s9, %s718_s23, %s718_s23, %s719_s24  }
  0x24   : > { %142 = sbr.rel (%p774_p6) target bundleno = 687 (0x2af), region = 28  ;;  %s144_s25 = sand.u32 (!%p774_p6), 1, %s705_s10  }
  0x25   : > { %s446_s27 = sshll.u32 (!%p774_p6), %s144_s25, 6  ;;  %s145_s28 = scalar_lea.sflag (!%p774_p6), [#allocation4], %s144_s25 }
  0x26   : > { %s817_s29 = scalar_lea.vmem (!%p774_p6), [#allocation3], %s446_s27 }
  0x29   : > { %688 = dma.done.wait (%p767_p5), %s145_s28, 1024  }
  0x2a   : > { %690 = vsyncadd (%p767_p5), %s145_s28, 4294966272 }
  0x2b   : > { %692 = dma.done.wait (%p38_p1), [#allocation7], 1024  }
  0x2c   : > { %694 = vsyncadd (%p38_p1), [#allocation7], 4294966272  ;;  %174 = sbr.rel (%p439_p4) target bundleno = 52 (0x34), region = 40 }
  0x31   : > { %v720_v0 = vmov 0.0  }
  0x32   : > { %175 = vst [vmem:[#allocation2] sm:$0xff] %v720_v0 }
  0x33   : > { %176 = vst [vmem:[#allocation2 + $0x8] sm:$0xff] %v720_v0 }
  0x34 PF: > { %v502_v1 = vld [vmem:[#allocation6 + $0x38] sm:$0xff]  ;;  %v501_v2 = vld [vmem:[#allocation6 + $0x30] sm:$0xff]  ;;  %v500_v3 = vld [vmem:[#allocation6 + $0x28] sm:$0xff]  ;;  %s830_s14 = sshll.u32 %s758_s13, 2  ;;  %p488_p13 = scmp.ne.s32.totalorder %s758_s13, 1 }
  0x35   : > { %247 = vmatpush.bf16.msra.mxu0 %v502_v1  ;;  %275 = vmatpush.bf16.msra.mxu1 %v502_v1  ;;  %v499_v4 = vld [vmem:[#allocation6 + $0x20] sm:$0xff]  ;;  %v498_v5 = vld [vmem:[#allocation6 + $0x18] sm:$0xff]  ;;  %v497_v6 = vld [vmem:[#allocation6 + $0x10] sm:$0xff]  ;;  %p265_p1 = scmp.lt.s32.totalorder %s830_s14, 8  ;;  %s293_s30 = sadd.s32 1, %s830_s14 }
  0x36   : > { %304 = vmatpush.bf16.msra.mxu2 %v502_v1  ;;  %333 = vmatpush.bf16.msra.mxu3 %v502_v1  ;;  %v496_v7 = vld [vmem:[#allocation6 + $0x8] sm:$0xff]  ;;  %v495_v8 = vld [vmem:[#allocation6] sm:$0xff]  ;;  %v482_v25 = vld [vmem:[%s817_s29 + $0x10] sm:$0xff]  ;;  %p294_p4 = scmp.lt.s32.totalorder %s293_s30, 8  ;;  %s322_s4 = sadd.s32 2, %s830_s14 }
  0x37   : > { %v196_v13 = vld [vmem:[%s817_s29] sm:$0xff]  ;;  %v197_v15 = vld [vmem:[%s817_s29 + $0x8] sm:$0xff]  ;;  %s266_s18 = scalar_select %p265_p1, 1, 0  ;;  %v483_v27 = vld [vmem:[%s817_s29 + $0x18] sm:$0xff] }
  0x38   : > { %s295_s3 = scalar_select %p294_p4, 1, 0  ;;  %v484_v37 = vld [vmem:[%s817_s29 + $0x20] sm:$0xff]  ;;  %v485_v39 = vld [vmem:[%s817_s29 + $0x28] sm:$0xff]  ;;  %v486_v48 = vld [vmem:[%s817_s29 + $0x30] sm:$0xff] }
  0x39   : > { %248 = vmatpush.bf16.msra.mxu0 %v501_v2  ;;  %276 = vmatpush.bf16.msra.mxu1 %v501_v2  ;;  %v194_v9 = vld [vmem:[#allocation2] sm:$0xff]  ;;  %v267_v18 = vstv %s266_s18  ;;  %p323_p5 = scmp.lt.s32.totalorder %s322_s4, 8  ;;  %s351_s6 = sadd.s32 3, %s830_s14  ;;  %v487_v52 = vld [vmem:[%s817_s29 + $0x38] sm:$0xff] }
  0x3a   : > { %305 = vmatpush.bf16.msra.mxu2 %v501_v2  ;;  %334 = vmatpush.bf16.msra.mxu3 %v501_v2  ;;  %v195_v10 = vld [vmem:[#allocation2 + $0x8] sm:$0xff]  ;;  %vm268_vm0 = vcmp.eq.s32.totalorder %v267_v18, 1  ;;  %v296_v30 = vstv %s295_s3  ;;  %p352_p6 = scmp.lt.s32.totalorder %s351_s6, 8 }
  0x3b   : > { %v198_v11 = vpack.c.bf16 %v195_v10, %v194_v9  ;;  %vm297_vm1 = vcmp.eq.s32.totalorder %v296_v30, 1  ;;  %s324_s5 = scalar_select %p323_p5, 1, 0 }
  0x3c   : > { %s353_s7 = scalar_select %p352_p6, 1, 0 }
  0x3d   : > { %249 = vmatpush.bf16.msra.mxu0 %v500_v3  ;;  %277 = vmatpush.bf16.msra.mxu1 %v500_v3  ;;  %v325_v42 = vstv %s324_s5 }
  0x3e   : > { %306 = vmatpush.bf16.msra.mxu2 %v500_v3  ;;  %335 = vmatpush.bf16.msra.mxu3 %v500_v3  ;;  %vm326_vm2 = vcmp.eq.s32.totalorder %v325_v42, 1  ;;  %v354_v51 = vstv %s353_s7 }
  0x3f   : > { %vm355_vm3 = vcmp.eq.s32.totalorder %v354_v51, 1 }
  0x41   : > { %250 = vmatpush.bf16.msra.mxu0 %v499_v4  ;;  %278 = vmatpush.bf16.msra.mxu1 %v499_v4 }
  0x42   : > { %307 = vmatpush.bf16.msra.mxu2 %v499_v4  ;;  %336 = vmatpush.bf16.msra.mxu3 %v499_v4 }
  0x45   : > { %251 = vmatpush.bf16.msra.mxu0 %v498_v5  ;;  %279 = vmatpush.bf16.msra.mxu1 %v498_v5 }
  0x46   : > { %308 = vmatpush.bf16.msra.mxu2 %v498_v5  ;;  %337 = vmatpush.bf16.msra.mxu3 %v498_v5 }
  0x49   : > { %252 = vmatpush.bf16.msra.mxu0 %v497_v6  ;;  %280 = vmatpush.bf16.msra.mxu1 %v497_v6 }
  0x4a   : > { %309 = vmatpush.bf16.msra.mxu2 %v497_v6  ;;  %338 = vmatpush.bf16.msra.mxu3 %v497_v6 }
  0x4d   : > { %253 = vmatpush.bf16.msra.mxu0 %v496_v7  ;;  %281 = vmatpush.bf16.msra.mxu1 %v496_v7 }
  0x4e   : > { %310 = vmatpush.bf16.msra.mxu2 %v496_v7  ;;  %339 = vmatpush.bf16.msra.mxu3 %v496_v7 }
  0x51   : > { %254 = vmatpush.bf16.msra.mxu0 %v495_v8  ;;  %282 = vmatpush.bf16.msra.mxu1 %v495_v8 }
  0x52   : > { %311 = vmatpush.bf16.msra.mxu2 %v495_v8  ;;  %340 = vmatpush.bf16.msra.mxu3 %v495_v8 }
  0x54   : > { %255 = vmatmul.bf16.vlgmr.msra.gmra.mxu0 %v198_v11 }
  0xd1   : > { %v256_v12 = vpop.f32.mrf.mxu0 }
  0xd2   : > { %v261_v14 = vadd.f32 %v256_v12, %v196_v13 }
  0xd4   : > { %567 = vtanh.f32 %v261_v14 }
  0xd9   : > { %v258_v16 = vpop.f32.mrf.mxu0 }
  0xda   : > { %v262_v17 = vadd.f32 %v258_v16, %v197_v15  ;;  %v568_v19 = vpop.eup %567 }
  0xdb   : > { %v269_v21 = vsel %vm268_vm0, %v568_v19, %v194_v9 }
  0xdc   : > { %569 = vtanh.f32 %v262_v17 }
  0xe2   : > { %v570_v20 = vpop.eup %569 }
  0xe3   : > { %v270_v22 = vsel %vm268_vm0, %v570_v20, %v195_v10 }
  0xe4   : > { %v274_v23 = vpack.c.bf16 %v270_v22, %v269_v21 }
  0xe6   : > { %283 = vmatmul.bf16.vlgmr.msra.gmra.mxu1 %v274_v23 }
 0x163   : > { %v284_v24 = vpop.f32.mrf.mxu1 }
 0x164   : > { %v289_v26 = vadd.f32 %v482_v25, %v284_v24 }
 0x166   : > { %571 = vtanh.f32 %v289_v26 }
 0x16b   : > { %v286_v28 = vpop.f32.mrf.mxu1 }
 0x16c   : > { %v290_v29 = vadd.f32 %v483_v27, %v286_v28  ;;  %v572_v31 = vpop.eup %571 }
 0x16d   : > { %v298_v33 = vsel %vm297_vm1, %v572_v31, %v269_v21 }
 0x16e   : > { %573 = vtanh.f32 %v290_v29 }
 0x174   : > { %v574_v32 = vpop.eup %573 }
 0x175   : > { %v299_v34 = vsel %vm297_vm1, %v574_v32, %v270_v22 }
 0x176   : > { %v303_v35 = vpack.c.bf16 %v299_v34, %v298_v33 }
 0x178   : > { %312 = vmatmul.bf16.vlgmr.msra.gmra.mxu2 %v303_v35 }
 0x1fb   : > { %v313_v36 = vpop.f32.mrf.mxu2 }
 0x1fc   : > { %v318_v38 = vadd.f32 %v484_v37, %v313_v36 }
 0x1fe   : > { %575 = vtanh.f32 %v318_v38 }
 0x203   : > { %v315_v40 = vpop.f32.mrf.mxu2 }
 0x204   : > { %v319_v41 = vadd.f32 %v485_v39, %v315_v40  ;;  %v576_v43 = vpop.eup %575 }
 0x205   : > { %v327_v45 = vsel %vm326_vm2, %v576_v43, %v298_v33 }
 0x206   : > { %577 = vtanh.f32 %v319_v41 }
 0x20c   : > { %v578_v44 = vpop.eup %577 }
 0x20d   : > { %v328_v46 = vsel %vm326_vm2, %v578_v44, %v299_v34 }
 0x20e   : > { %v332_v47 = vpack.c.bf16 %v328_v46, %v327_v45 }
 0x210   : > { %341 = vmatmul.bf16.vlgmr.msra.gmra.mxu3 %v332_v47 }
 0x293   : > { %v342_v49 = vpop.f32.mrf.mxu3 }
 0x294   : > { %v347_v50 = vadd.f32 %v486_v48, %v342_v49 }
 0x296   : > { %579 = vtanh.f32 %v347_v50 }
 0x29b   : > { %v344_v53 = vpop.f32.mrf.mxu3 }
 0x29c   : > { %v580_v54 = vpop.eup %579  ;;  %v348_v55 = vadd.f32 %v487_v52, %v344_v53 }
 0x29d   : > { %v356_v56 = vsel %vm355_vm3, %v580_v54, %v327_v45 }
 0x29e   : > { %358 = vst [vmem:[#allocation2] sm:$0xff] %v356_v56  ;;  %581 = vtanh.f32 %v348_v55 }
 0x2a2   : > { %363 = sbr.rel (%p488_p13) target bundleno = 681 (0x2a9), region = 44 }
 0x2a4   : > { %v582_v57 = vpop.eup %581 }
 0x2a5   : > { %v357_v58 = vsel %vm355_vm3, %v582_v57, %v328_v46 }
 0x2a6   : > { %359 = vst [vmem:[#allocation2 + $0x8] sm:$0xff] %v357_v58 }
 0x2a7   : > { %364 = vst [vmem:[#allocation8] sm:$0xff] %v356_v56 }
 0x2a8   : > { %365 = vst [vmem:[#allocation8 + $0x8] sm:$0xff] %v357_v58 }
 0x2a9 PF: > { %p524_p0 = scmp.eq.s32.totalorder %s758_s13, 1  ;;  %s721_s8 = smov [#allocation8]  }
 0x2aa   : > { %s371_s9 = sshll.u32 %s721_s8, 4  ;;  %s373_s12 = sshll.u32 %s864_s2, 4  ;;  %s372_s9 = int_to_ptr.vmem [resolvable:$true] %s371_s9  ;;  %s374_s12 = int_to_ptr.hbm [resolvable:$true] %s373_s12 }
 0x2ab   : > { %s722_s17 = smov 128   ;;  %s723_s19 = smov 8  }
 0x2ac   : > { %510 = dma.vmem_to_hbm [thread:$0]  (%p524_p0), %s372_s9, 256, %s374_s12, [#allocation5], %s722_s17, %s722_s17, %s723_s19  }
 0x2ad   : > { %696 = dma.done.wait (%p524_p0), [#allocation5], 256  }
 0x2ae   : > { %698 = vsyncadd (%p524_p0), [#allocation5], 4294967040 }
 0x2af PF: > { %p14_p2 = scmp.ge.s32.totalorder %s783_s21, 4   ;;  %s868_s9 = smov %s705_s10 }
 0x2b0   : > { %s869_s10 = smov %s709_s11  ;;  %s870_s11 = smov %s793_s26 }
 0x2b1   : > { %s871_s12 = smov %s783_s21  ;;  %16 = sbr.rel (!%p14_p2) target bundleno = 5 (0x5), region = 80 }
 0x2b6   :  { %390 = vsyncpa [#allocation4], 1 }
 0x2b7   :  { %392 = vsyncpa [#allocation4 + $0x1], 1 }
 0x2b8   :  { %393 = vsyncpa [#allocation7], 1 }
 0x2b9   :  { %394 = vsyncpa [#allocation5], 1 }
 0x2ba   :  { %396 = vsyncpa [#allocation5 + $0x1], 1 }

</bundles_post_ra>
